<compile_context>
chip_gen: v7x
topology: tpu7x:2x2x1
jax: 0.10.0
libtpu: 0.0.40
codegen_flags: <defaults>
</compile_context>

<pallas_src>
import jax
import jax.numpy as jnp
from jax.experimental import pallas as pl
from jax.experimental.pallas import tpu as pltpu


def _round_up(x, m):
    return ((x + m - 1) // m) * m


def _logreg_kernel(x_ref, w_ref, b_ref, o_ref):
    # x_ref: (TB, D)  w_ref: (D, Cp)  b_ref: (1, Cp)  o_ref: (TB, C), C <= Cp
    logits = jnp.dot(x_ref[...], w_ref[...], preferred_element_type=jnp.float32)
    logits = logits + b_ref[...]  # bias broadcast (1, Cp) -> (TB, Cp), f32
    # numerically-stable softmax along the (padded) class axis
    m = jnp.max(logits, axis=-1, keepdims=True)
    e = jnp.exp(logits - m)
    denom = jnp.sum(e, axis=-1, keepdims=True)
    inv = pl.reciprocal(denom, approx=True)      # EUP vrcp (overlaps VPU work)
    inv = inv * (2.0 - denom * inv)              # one Newton step -> f32-exact
    probs = e * inv
    c = o_ref.shape[-1]
    # compact store: only the real classes, in the output dtype
    o_ref[...] = probs[:, :c].astype(o_ref.dtype)


def _vmem_budget_and_limit():
    """Generation-aware VMEM budget (v5e/v6e: 128 MiB physical, v7x: 64 MiB/TC)."""
    try:
        cap = pltpu.get_tpu_info().vmem_capacity_bytes
    except Exception:
        cap = 64 * 1024 * 1024  # conservative fallback: smallest per-core VMEM (v7x)
    limit = min((cap * 3) // 4, 100 * 1024 * 1024)  # explicit scoped-VMEM limit
    budget = (limit * 4) // 5                       # headroom for compiler temporaries
    return budget, limit


def _choose_batch_tile(B, D, Cp, C, in_bytes, out_bytes, budget_bytes):
    """Largest batch tile (multiple of 8) whose working set fits the VMEM budget."""
    tb = min(4096, _round_up(B, 8))
    # v7x: 2 TensorCores split the "parallel" batch axis -> keep >= 4 grid steps
    # once the batch is big enough for that to matter.
    if B >= 4 * 512:
        tb = min(tb, _round_up(pl.cdiv(B, 4), 8))
    while tb > 8:
        need = (
            D * Cp * in_bytes          # W, single-buffered (constant index_map)
            + Cp * 4                   # bias, single-buffered
            + 3 * tb * D * in_bytes    # x tile, up to 3 pipeline buffers
            + 2 * tb * C * out_bytes   # compact output tile, double-buffered
        )
        if need <= budget_bytes:
            break
        tb = max(8, tb // 2)
    # prefer a tile that divides B exactly (skips the wrapper-side pad copy)
    if B % tb != 0 and B % 8 == 0:
        t = tb
        while t > 8 and B % t != 0:
            t -= 8
        if B % t == 0 and t >= tb // 2:
            tb = t
    return tb


def logistic_regression(x, w, b):
    """x: (B, ...) flattened to (B, D); w: (D, C); b: (C,). Returns (B, C) probs."""
    B = x.shape[0]
    x2d = x.reshape(B, -1)
    D = x2d.shape[1]
    C = w.shape[1]

    compute_dtype = x2d.dtype       # keep MXU inputs in their native dtype
    out_dtype = compute_dtype       # bf16 in -> bf16 probs (halves output HBM bytes)
    w = w.astype(compute_dtype)

    LANE = 128
    Cp = _round_up(max(C, LANE), LANE)  # lane-dense class dim for the MXU

    in_bytes = jnp.dtype(compute_dtype).itemsize
    out_bytes = jnp.dtype(out_dtype).itemsize
    budget, vmem_limit = _vmem_budget_and_limit()

    # TODO(synk): if the weight block alone (D*Cp*in_bytes) exceeds the VMEM
    # budget, add a class-/K-dim grid axis with an online-softmax accumulator;
    # currently W is kept fully resident in VMEM.
    tb = _choose_batch_tile(B, D, Cp, C, in_bytes, out_bytes, budget)
    Bp = _round_up(B, tb)

    # pad batch rows (zeros, sliced off afterwards) and classes
    # (W cols = 0, bias = -1e30 so padded classes contribute exp() == 0)
    if Bp != B:
        x2d = jnp.pad(x2d, ((0, Bp - B), (0, 0)))
    if Cp != C:
        w_p = jnp.pad(w, ((0, 0), (0, Cp - C)))
        b_p = jnp.concatenate(
            [b.astype(jnp.float32), jnp.full((Cp - C,), -1e30, jnp.float32)]
        )
    else:
        w_p = w
        b_p = b.astype(jnp.float32)
    b2d = b_p.reshape(1, Cp)

    n_steps = Bp // tb
    grid = (n_steps,)

    cost = pl.CostEstimate(
        flops=2 * Bp * D * Cp,
        transcendentals=Bp * Cp,
        bytes_accessed=(Bp * D * in_bytes + D * Cp * in_bytes
                        + Cp * 4 + Bp * C * out_bytes),
    )

    x_spec = pl.BlockSpec(
        (tb, D), lambda i: (i, 0),
        pipeline_mode=pl.Buffered(3) if n_steps >= 3 else None,  # hide DMA issue latency
    )
    w_spec = pl.BlockSpec((D, Cp), lambda i: (0, 0),
                          pipeline_mode=pl.Buffered(1))  # resident, single buffer
    b_spec = pl.BlockSpec((1, Cp), lambda i: (0, 0),
                          pipeline_mode=pl.Buffered(1))  # resident, single buffer
    o_spec = pl.BlockSpec((tb, C), lambda i: (i, 0))     # compact, last dim == full dim

    out = pl.pallas_call(
        _logreg_kernel,
        out_shape=jax.ShapeDtypeStruct((Bp, C), out_dtype),
        grid_spec=pltpu.PrefetchScalarGridSpec(
            num_scalar_prefetch=0,
            grid=grid,
            in_specs=[x_spec, w_spec, b_spec],
            out_specs=o_spec,
        ),
        compiler_params=pltpu.CompilerParams(
            dimension_semantics=("parallel",),   # megacore-shardable on v7x
            vmem_limit_bytes=vmem_limit,
        ),
        cost_estimate=cost,
    )(x2d, w_p, b2d)

    return out if Bp == B else out[:B]


if __name__ == "__main__":
    key = jax.random.PRNGKey(0)
    kx, kw, kb = jax.random.split(key, 3)

    batch = 8
    input_size = 64      # flattened feature size
    num_classes = 16

    # Deterministic parameter init mimicking nn.Linear: U(-1/sqrt(in), 1/sqrt(in)).
    bound = 1.0 / (input_size ** 0.5)
    w = jax.random.uniform(kw, (input_size, num_classes), jnp.float32, -bound, bound)
    b = jax.random.uniform(kb, (num_classes,), jnp.float32, -bound, bound)

    x = jax.random.normal(kx, (batch, input_size), jnp.float32)

    out = logistic_regression(x, w, b)
    out = jax.block_until_ready(out)

    # correctness check against plain JAX reference
    ref = jax.nn.softmax(x.reshape(batch, -1) @ w + b, axis=1)
    assert out.shape == (batch, num_classes)
    assert jnp.allclose(out, ref, atol=1e-3, rtol=1e-3)
    assert jnp.allclose(jnp.sum(out, axis=1), 1.0, atol=1e-3)

    print("KERNEL_OK")
</pallas_src>

<mosaic_0001>
module attributes {stable_mosaic.version = 11 : i64} {
  func.func @_logreg_kernel(%arg0: i32, %arg1: memref<8x64xf32, #tpu.memory_space<vmem>>, %arg2: memref<64x128xf32, #tpu.memory_space<vmem>>, %arg3: memref<1x128xf32, #tpu.memory_space<vmem>>, %arg4: memref<8x16xf32, #tpu.memory_space<vmem>>) attributes {dimension_semantics = [#tpu.dimension_semantics<parallel>], iteration_bounds = array<i64: 1>, scalar_prefetch = 0 : i64, scratch_operands = 0 : i64, tpu.core_type = #tpu.core_type<tc>, window_params = [{transform_indices = @transform_0, window_bounds = array<i64: 8, 64>}, {pipeline_mode = #tpu.pipeline_mode<synchronous>, transform_indices = @transform_1, window_bounds = array<i64: 64, 128>}, {pipeline_mode = #tpu.pipeline_mode<synchronous>, transform_indices = @transform_2, window_bounds = array<i64: 1, 128>}, {transform_indices = @transform_3, window_bounds = array<i64: 8, 16>}]} {
    %c0 = arith.constant 0 : index
    %c0_0 = arith.constant 0 : index
    %0 = vector.load %arg1[%c0, %c0_0] : memref<8x64xf32, #tpu.memory_space<vmem>>, vector<8x64xf32>
    %c0_1 = arith.constant 0 : index
    %c0_2 = arith.constant 0 : index
    %1 = vector.load %arg2[%c0_1, %c0_2] : memref<64x128xf32, #tpu.memory_space<vmem>>, vector<64x128xf32>
    %cst = arith.constant dense<0.000000e+00> : vector<8x128xf32>
    %2 = tpu.matmul %0, %1, %cst {dimension_numbers = #tpu.dot_dimension_numbers<[1], [0], [0], [1], [0, 0, 1, 1], [], []>} : vector<8x64xf32>, vector<64x128xf32>, vector<8x128xf32> -> vector<8x128xf32>
    %c0_3 = arith.constant 0 : index
    %c0_4 = arith.constant 0 : index
    %3 = vector.load %arg3[%c0_3, %c0_4] : memref<1x128xf32, #tpu.memory_space<vmem>>, vector<1x128xf32>
    %4 = vector.broadcast %3 : vector<1x128xf32> to vector<8x128xf32>
    %5 = arith.addf %2, %4 : vector<8x128xf32>
    %cst_5 = arith.constant dense<0xFF800000> : vector<8xf32>
    %6 = vector.multi_reduction <maximumf>, %5, %cst_5 [1] : vector<8x128xf32> to vector<8xf32>
    %7 = vector.shape_cast %6 : vector<8xf32> to vector<8x1xf32>
    %8 = vector.broadcast %7 : vector<8x1xf32> to vector<8x128xf32>
    %9 = arith.subf %5, %8 : vector<8x128xf32>
    %10 = math.exp %9 : vector<8x128xf32>
    %cst_6 = arith.constant dense<0.000000e+00> : vector<8xf32>
    %11 = vector.multi_reduction <add>, %10, %cst_6 [1] : vector<8x128xf32> to vector<8xf32>
    %12 = vector.shape_cast %11 : vector<8xf32> to vector<8x1xf32>
    %13 = tpu.reciprocal %12 {approx = true} : vector<8x1xf32> -> vector<8x1xf32>
    %14 = arith.mulf %12, %13 : vector<8x1xf32>
    %cst_7 = arith.constant 2.000000e+00 : f32
    %15 = vector.broadcast %cst_7 : f32 to vector<8x1xf32>
    %16 = arith.subf %15, %14 : vector<8x1xf32>
    %17 = arith.mulf %13, %16 : vector<8x1xf32>
    %18 = vector.broadcast %17 : vector<8x1xf32> to vector<8x128xf32>
    %19 = arith.mulf %10, %18 : vector<8x128xf32>
    %20 = vector.extract_strided_slice %19 {offsets = [0, 0], sizes = [8, 16], strides = [1, 1]} : vector<8x128xf32> to vector<8x16xf32>
    %c0_8 = arith.constant 0 : index
    %c0_9 = arith.constant 0 : index
    %21 = vector.load %arg4[%c0_8, %c0_9] : memref<8x16xf32, #tpu.memory_space<vmem>>, vector<8x16xf32>
    tpu.vector_store %arg4[%c0_8, %c0_9], %20 {strides = array<i32>} : memref<8x16xf32, #tpu.memory_space<vmem>>, vector<8x16xf32>,
    return
  }
  func.func @transform_0(%arg0: i32) -> (i32, i32) {
    %c0_i32 = arith.constant 0 : i32
    %c0_i32_0 = arith.constant 0 : i32
    return %arg0, %c0_i32 : i32, i32
  }
  func.func @transform_1(%arg0: i32) -> (i32, i32) {
    %c0_i32 = arith.constant 0 : i32
    %c0_i32_0 = arith.constant 0 : i32
    %c0_i32_1 = arith.constant 0 : i32
    return %c0_i32, %c0_i32_0 : i32, i32
  }
  func.func @transform_2(%arg0: i32) -> (i32, i32) {
    %c0_i32 = arith.constant 0 : i32
    %c0_i32_0 = arith.constant 0 : i32
    %c0_i32_1 = arith.constant 0 : i32
    return %c0_i32, %c0_i32_0 : i32, i32
  }
  func.func @transform_3(%arg0: i32) -> (i32, i32) {
    %c0_i32 = arith.constant 0 : i32
    %c0_i32_0 = arith.constant 0 : i32
    return %arg0, %c0_i32 : i32, i32
  }
}

</mosaic_0001>

<bundles_post_ra>
// kernel: tpu_custom_call.1
= control target key start
LH: loop header
LB: loop body
LE: loop exit
PB: predicated region body
PF: predicated region fallthrough
CT: control target
= control target key end

     0   :  { %8 = vsyncpa [#allocation3], 0  ;;  %s361_s0 = inlined_call_operand.hbm [shape: f32[8,64], index: 0, kind: input, shape index: {}]   ;;  %s362_s1 = inlined_call_operand.hbm [shape: f32[64,128], index: 1, kind: input, shape index: {}]   ;;  %s363_s2 = inlined_call_operand.vmem [shape: f32[1,128], index: 2, kind: input, shape index: {}]   ;;  %s364_s3 = inlined_call_operand.hbm [shape: f32[8,16], index: 3, kind: output, shape index: {}]  }
   0x1   :  { %9 = vsyncpa [#allocation6], 0 }
   0x2   :  { %10 = vsyncpa [#allocation4], 0  ;;  %s287_s12 = smov [#allocation2]   ;;  %s288_s14 = smov [#allocation5]  }
   0x3   :  { %s17_s13 = sshll.u32 %s287_s12, 4  ;;  %s26_s15 = sshll.u32 %s288_s14, 4  ;;  %s18_s13 = int_to_ptr.vmem [resolvable:$true] %s17_s13  ;;  %s315_s15 = int_to_ptr.vmem [resolvable:$true] %s26_s15 }
   0x4   :  { %s215_s18 = scalar_lea.hbm %s361_s0, 128 }
   0x5   :  { %p216_p0 = scmp.ne.s32.totalorder %s361_s0, %s215_s18  ;;  %p219_p1 = scmp.lt.u32.totalorder %s215_s18, %s361_s0 }
   0x7   :  { %p221_p2 = pnand %p219_p1, %p216_p0 }
   0x9   :  { %224 = shalt.err (!%p221_p2)
}
   0xa   :  { %s225_s23 = scalar_lea.vmem %s18_s13, 128  ;;  %p230_p4 = scmp.lt.s32.totalorder %s18_s13, %s18_s13 }
   0xb   :  { %p226_p3 = scmp.ne.s32.totalorder %s18_s13, %s225_s23  ;;  %p231_p5 = scmp.lt.s32.totalorder %s225_s23, %s225_s23 }
   0xd   :  { %p232_p6 = por %p231_p5, %p230_p4 }
   0xf   :  { %p233_p7 = pnand %p232_p6, %p226_p3 }
  0x11   :  { %236 = shalt.err (!%p233_p7)
}
  0x12   :  { %20 = dma.hbm_to_vmem [thread:$0]  %s361_s0, 128, %s18_s13, [#allocation3]  }
  0x13   :  { %s237_s28 = scalar_lea.hbm %s362_s1, 1024 }
  0x14   :  { %p238_p8 = scmp.ne.s32.totalorder %s362_s1, %s237_s28  ;;  %p241_p9 = scmp.lt.u32.totalorder %s237_s28, %s362_s1 }
  0x16   :  { %p243_p10 = pnand %p241_p9, %p238_p8 }
  0x18   :  { %246 = shalt.err (!%p243_p10)
}
  0x19   :  { %s247_s6 = scalar_lea.vmem %s315_s15, 1024  ;;  %p252_p12 = scmp.lt.s32.totalorder %s315_s15, %s315_s15 }
  0x1a   :  { %p248_p11 = scmp.ne.s32.totalorder %s315_s15, %s247_s6  ;;  %p253_p13 = scmp.lt.s32.totalorder %s247_s6, %s247_s6 }
  0x1c   :  { %p254_p0 = por %p253_p13, %p252_p12 }
  0x1e   :  { %p255_p1 = pnand %p254_p0, %p248_p11 }
  0x20   :  { %258 = shalt.err (!%p255_p1)
}
  0x21   :  { %s289_s0 = smov 128   ;;  %s290_s7 = smov 8  }
  0x22   :  { %32 = dma.hbm_to_vmem [thread:$0]  %s362_s1, 1024, %s315_s15, [#allocation6], %s289_s0, %s289_s0, %s290_s7  }
  0x23   :  { %281 = dma.done.wait [#allocation3], 128  }
  0x24   :  { %282 = vsyncadd [#allocation3], 4294967168 }
  0x25   :  { %283 = dma.done.wait [#allocation6], 1024  }
  0x26   :  { %284 = vsyncadd [#allocation6], 4294966272  ;;  %v291_v0 = vmov 0.0|0.0   ;;  %vm292_vm0 = vmmov 0   ;;  %v293_v1 = vmov 0.0   ;;  %v42_v2 = vld [vmem:[#allocation5] sm:$0xff] }
  0x27   :  { %191 = vmatprep.subr.bf16.mxu0 %v291_v0  ;;  %188 = vmatprep.mubr.msk.f32.mxu0 %vm292_vm0, %v293_v1  ;;  %v43_v3 = vld [vmem:[#allocation5 + $0x8] sm:$0xff]  ;;  %v44_v4 = vld [vmem:[#allocation5 + $0x10] sm:$0xff]  ;;  %v45_v6 = vld [vmem:[#allocation5 + $0x18] sm:$0xff]  ;;  %vm57_vm1 = vcmask 523264   ;;  %s294_s11 = smov [#allocation7]   ;;  %vm143_vm2 = vcmask 130048  }
  0x28   :  { %v192_v5 = vpack.c.bf16 %v43_v3, %v42_v2  ;;  %v195_v7 = vpack.c.bf16 %v45_v6, %v44_v4  ;;  %v46_v8 = vld [vmem:[#allocation5 + $0x20] sm:$0xff]  ;;  %v47_v9 = vld [vmem:[#allocation5 + $0x28] sm:$0xff]  ;;  %v48_v11 = vld [vmem:[#allocation5 + $0x30] sm:$0xff]  ;;  %s151_s12 = sshll.u32 %s294_s11, 4  ;;  %s152_s12 = int_to_ptr.vmem [resolvable:$true] %s151_s12 }
  0x29   :  { %v198_v10 = vpack.c.bf16 %v47_v9, %v46_v8  ;;  %v49_v12 = vld [vmem:[#allocation5 + $0x38] sm:$0xff]  ;;  %p264_p3 = scmp.lt.s32.totalorder %s152_s12, %s152_s12 }
  0x2a   :  { %193 = vmatpush3.bf16.msra.mxu0 %v192_v5  ;;  %v201_v13 = vpack.c.bf16 %v49_v12, %v48_v11  ;;  %v41_v14 = vld [vmem:[#allocation2] sm:$0xff] }
  0x2b   :  { %194 = vmatprep.subr.bf16.mxu0 %v291_v0  ;;  %v161_v15 = vld [vmem:[%s363_s2] ss:$0 sm:$0xff]  ;;  %s259_s2 = scalar_lea.vmem %s152_s12, 128 }
  0x2c   :  { %p260_p2 = scmp.ne.s32.totalorder %s152_s12, %s259_s2  ;;  %p265_p4 = scmp.lt.s32.totalorder %s259_s2, %s259_s2 }
  0x2e   :  { %196 = vmatpush3.bf16.msra.mxu0 %v195_v7  ;;  %p266_p5 = por %p265_p4, %p264_p3 }
  0x2f   :  { %197 = vmatprep.subr.bf16.mxu0 %v291_v0 }
  0x30   :  { %p267_p6 = pnand %p266_p5, %p260_p2 }
  0x32   :  { %199 = vmatpush3.bf16.msra.mxu0 %v198_v10 }
  0x33   :  { %200 = vmatprep.subr.bf16.mxu0 %v291_v0 }
  0x36   :  { %202 = vmatpush3.bf16.msra.mxu0 %v201_v13 }
  0x39   :  { %189 = vmatmul.mubr.msk.f32.vlgmr.msra.gmra.mrb[0].mxu0 %vm57_vm1, %v41_v14 }
 0x10c   :  { %v127_v16 = vpop.f32.mrb[0].mxu0 }
 0x10d   :  { %v128_v17 = vadd.f32 %v161_v15, %v127_v16  ;;  %v190_v18 = vpop.f32.mrb[1].mxu0 }
 0x10f   :  { %131 = vmax.xlane.f32.xlu0 %v128_v17 }
 0x19c   :  { %v132_v19 = vpop.xlane.xlu0 %131 }
 0x19d   :  { %v133_v20 = vsub.f32 %v128_v17, %v132_v19 }
 0x19f   :  { %v134_v21 = vmul.f32 1.442695, %v133_v20 }
 0x1a1   :  { %211 = vpow2.f32 %v134_v21 }
 0x1ab   :  { %v212_v22 = vpop.eup %211 }
 0x1ac   :  { %136 = vadd.xlane.f32.xlu0 %v212_v22 }
 0x239   :  { %v137_v23 = vpop.xlane.xlu0 %136 }
 0x23a   :  { %213 = vrcp.f32 %v137_v23 }
 0x244   :  { %v214_v24 = vpop.eup %213 }
 0x245   :  { %v139_v25 = vmul.f32 %v214_v24, %v137_v23 }
 0x247   :  { %v140_v26 = vsub.f32 2.0, %v139_v25 }
 0x249   :  { %v141_v27 = vmul.f32 %v214_v24, %v140_v26 }
 0x24b   :  { %v142_v28 = vmul.f32 %v212_v22, %v141_v27 }
 0x24d   :  { %144 = vst.msk [vmem:[#allocation7] sm:$0xff] %vm143_vm2, %v142_v28 }
 0x24e   :  { %270 = shalt.err (!%p267_p6)
}
 0x24f   :  { %s271_s15 = scalar_lea.hbm %s364_s3, 128 }
 0x250   :  { %p272_p7 = scmp.ne.s32.totalorder %s364_s3, %s271_s15  ;;  %p275_p8 = scmp.lt.u32.totalorder %s271_s15, %s364_s3 }
 0x252   :  { %p277_p9 = pnand %p275_p8, %p272_p7 }
 0x254   :  { %280 = shalt.err (!%p277_p9)
}
 0x255   :  { %154 = dma.vmem_to_hbm [thread:$0]  %s152_s12, 128, %s364_s3, [#allocation4]  }
 0x256   :  { %285 = dma.done.wait [#allocation4], 128  }
 0x257   :  { %286 = vsyncadd [#allocation4], 4294967168 }
 0x258   :  { %158 = vsyncpa [#allocation3], 1 }
 0x259   :  { %159 = vsyncpa [#allocation6], 1 }
 0x25a   :  { %160 = vsyncpa [#allocation4], 1 }

</bundles_post_ra>
